<compile_context>
chip_gen: v5e
topology: v5e:2x2
jax: 0.10.0
libtpu: 0.0.40
codegen_flags: <defaults>
</compile_context>

<pallas_src>
import jax
import jax.numpy as jnp
from jax.experimental import pallas as pl
from jax.experimental.pallas import tpu as pltpu  # noqa: F401  (not needed at this footprint)


# ----------------------------------------------------------------------------
# Single fused kernel: tanh-RNN scan over T + Linear on output[:, -1].
# ----------------------------------------------------------------------------
def fused_rnn_fc_kernel(x_ref, h0_ref, whh_t_ref, wih_row_ref, b_ref,
                        wfc_ref, bfc_ref, out_ref, hT_ref):
    T, B, _ = x_ref.shape                       # I == 1 (asserted in the wrapper)

    whh_t = whh_t_ref[...]                      # (H, H)  loaded once, stays in vregs
    wih_row = wih_row_ref[...]                  # (1, H)  row of W_ih^T (I == 1)
    b = b_ref[...]                              # (1, H)  combined bias b_ih + b_hh

    # Hoisted input projection + bias for ALL timesteps (outer product via VPU
    # broadcast, no K=1 MXU matmuls inside the serial recurrence):
    #   pre_in[t] = x[t] @ W_ih^T + b_ih + b_hh
    pre_in = x_ref[...] * wih_row + b           # (T,B,1)*(1,H)+(1,H) -> (T, B, H)

    # Recurrence: fully unrolled (T is small & static), h carried in vregs.
    # Equivalent to lax.fori_loop(0, T, ..., unroll=True) but with static indices,
    # which gives the scheduler full visibility and avoids any dynamic addressing.
    h = h0_ref[...]                             # (B, H)
    rows = []
    for t in range(T):
        pre = pre_in[t] + jnp.dot(h, whh_t, preferred_element_type=jnp.float32)
        h = jnp.tanh(pre)                       # (B, H)
        # output[:, -1] with batch_first=False selects the LAST BATCH element
        # of every timestep (faithful to the PyTorch module as written).
        rows.append(h[B - 1:B, :])              # (1, H)

    hT_ref[...] = h                             # final hidden state, written once

    slab = jnp.concatenate(rows, axis=0)        # (T, H), lives in vregs
    out_ref[...] = (jnp.dot(slab, wfc_ref[...],
                            preferred_element_type=jnp.float32)
                    + bfc_ref[...])             # (T, 1), written once


# ----------------------------------------------------------------------------
# Module wrapper (matches Net.forward semantics)
# ----------------------------------------------------------------------------
def net_forward(params, x, hidden):
    # x: (T, B, I) with I == 1, hidden: (1, B, H)
    T, B, I = x.shape
    H = params["w_hh"].shape[0]
    assert I == 1, "Net uses input_size=1 (input projection is an outer product)"

    h0 = hidden[0]                                          # (B, H)
    whh_t = params["w_hh"].T                                # (H, H)
    wih_row = params["w_ih"].reshape(1, H)                  # (H, 1) -> (1, H)
    b = (params["b_ih"] + params["b_hh"]).reshape(1, H)     # combined bias
    wfc_t = params["w_fc"].T                                # (H, 1)
    bfc = params["b_fc"].reshape(1, 1)                      # (1, 1)

    out, hT = pl.pallas_call(
        fused_rnn_fc_kernel,
        out_shape=(
            jax.ShapeDtypeStruct((T, 1), jnp.float32),      # fc(output[:, -1])
            jax.ShapeDtypeStruct((B, H), jnp.float32),      # final hidden state
        ),
        grid=(),                                            # single invocation
        in_specs=[
            pl.BlockSpec((T, B, I), lambda: (0, 0, 0)),     # x (whole array)
            pl.BlockSpec((B, H), lambda: (0, 0)),           # h0
            pl.BlockSpec((H, H), lambda: (0, 0)),           # W_hh^T
            pl.BlockSpec((1, H), lambda: (0, 0)),           # W_ih^T row
            pl.BlockSpec((1, H), lambda: (0, 0)),           # b_ih + b_hh
            pl.BlockSpec((H, 1), lambda: (0, 0)),           # W_fc^T
            pl.BlockSpec((1, 1), lambda: (0, 0)),           # b_fc
        ],
        out_specs=(
            pl.BlockSpec((T, 1), lambda: (0, 0)),
            pl.BlockSpec((B, H), lambda: (0, 0)),
        ),
    )(x, h0, whh_t, wih_row, b, wfc_t, bfc)

    return out, hT[None]                                    # (T, 1), (1, B, H)


# Pure-JAX reference for validation.
def net_forward_ref(params, x, hidden):
    def step(h, x_t):
        h_new = jnp.tanh(x_t @ params["w_ih"].T + params["b_ih"]
                         + h @ params["w_hh"].T + params["b_hh"])
        return h_new, h_new
    hT, outs = jax.lax.scan(step, hidden[0], x)
    out = outs[:, -1, :] @ params["w_fc"].T + params["b_fc"]
    return out, hT[None]


if __name__ == "__main__":
    input_size = 1
    hidden_size = 32
    T, B = 8, 2

    key = jax.random.PRNGKey(0)
    ks = jax.random.split(key, 8)
    bound = 1.0 / jnp.sqrt(hidden_size)
    params = {
        "w_ih": jax.random.uniform(ks[0], (hidden_size, input_size),
                                   jnp.float32, -bound, bound),
        "w_hh": jax.random.uniform(ks[1], (hidden_size, hidden_size),
                                   jnp.float32, -bound, bound),
        "b_ih": jax.random.uniform(ks[2], (hidden_size,), jnp.float32, -bound, bound),
        "b_hh": jax.random.uniform(ks[3], (hidden_size,), jnp.float32, -bound, bound),
        "w_fc": jax.random.uniform(ks[4], (1, hidden_size), jnp.float32, -bound, bound),
        "b_fc": jax.random.uniform(ks[5], (1,), jnp.float32, -bound, bound),
    }

    x = jax.random.normal(ks[6], (T, B, input_size), jnp.float32)
    hidden = jax.random.normal(ks[7], (1, B, hidden_size), jnp.float32)

    out, h = jax.block_until_ready(net_forward(params, x, hidden))
    out_ref, h_ref = net_forward_ref(params, x, hidden)

    assert out.shape == (T, 1) and h.shape == (1, B, hidden_size)
    assert jnp.allclose(out, out_ref, atol=1e-5, rtol=1e-5)
    assert jnp.allclose(h, h_ref, atol=1e-5, rtol=1e-5)
    print("KERNEL_OK")
</pallas_src>

<mosaic_0001>
module attributes {stable_mosaic.version = 11 : i64} {
  func.func @fused_rnn_fc_kernel(%arg0: memref<8x2x1xf32, #tpu.memory_space<vmem>>, %arg1: memref<2x32xf32, #tpu.memory_space<vmem>>, %arg2: memref<32x32xf32, #tpu.memory_space<vmem>>, %arg3: memref<1x32xf32, #tpu.memory_space<vmem>>, %arg4: memref<1x32xf32, #tpu.memory_space<vmem>>, %arg5: memref<32x1xf32, #tpu.memory_space<vmem>>, %arg6: memref<1x1xf32, #tpu.memory_space<vmem>>, %arg7: memref<8x1xf32, #tpu.memory_space<vmem>>, %arg8: memref<2x32xf32, #tpu.memory_space<vmem>>) attributes {dimension_semantics = [], scalar_prefetch = 0 : i64, scratch_operands = 0 : i64, tpu.core_type = #tpu.core_type<tc>} {
    %c0 = arith.constant 0 : index
    %c0_0 = arith.constant 0 : index
    %0 = vector.load %arg2[%c0, %c0_0] : memref<32x32xf32, #tpu.memory_space<vmem>>, vector<32x32xf32>
    %c0_1 = arith.constant 0 : index
    %c0_2 = arith.constant 0 : index
    %1 = vector.load %arg3[%c0_1, %c0_2] : memref<1x32xf32, #tpu.memory_space<vmem>>, vector<1x32xf32>
    %c0_3 = arith.constant 0 : index
    %c0_4 = arith.constant 0 : index
    %2 = vector.load %arg4[%c0_3, %c0_4] : memref<1x32xf32, #tpu.memory_space<vmem>>, vector<1x32xf32>
    %c0_5 = arith.constant 0 : index
    %c0_6 = arith.constant 0 : index
    %c0_7 = arith.constant 0 : index
    %3 = vector.load %arg0[%c0_5, %c0_6, %c0_7] : memref<8x2x1xf32, #tpu.memory_space<vmem>>, vector<8x2x1xf32>
    %4 = vector.shape_cast %1 : vector<1x32xf32> to vector<1x1x32xf32>
    %5 = vector.broadcast %3 : vector<8x2x1xf32> to vector<8x2x32xf32>
    %6 = vector.broadcast %4 : vector<1x1x32xf32> to vector<8x2x32xf32>
    %7 = arith.mulf %5, %6 : vector<8x2x32xf32>
    %8 = vector.shape_cast %2 : vector<1x32xf32> to vector<1x1x32xf32>
    %9 = vector.broadcast %8 : vector<1x1x32xf32> to vector<8x2x32xf32>
    %10 = arith.addf %7, %9 : vector<8x2x32xf32>
    %c0_8 = arith.constant 0 : index
    %c0_9 = arith.constant 0 : index
    %11 = vector.load %arg1[%c0_8, %c0_9] : memref<2x32xf32, #tpu.memory_space<vmem>>, vector<2x32xf32>
    %12 = vector.extract_strided_slice %10 {offsets = [0, 0, 0], sizes = [1, 2, 32], strides = [1, 1, 1]} : vector<8x2x32xf32> to vector<1x2x32xf32>
    %13 = vector.shape_cast %12 : vector<1x2x32xf32> to vector<2x32xf32>
    %cst = arith.constant dense<0.000000e+00> : vector<2x32xf32>
    %14 = tpu.matmul %11, %0, %cst {dimension_numbers = #tpu.dot_dimension_numbers<[1], [0], [0], [1], [0, 0, 1, 1], [], []>} : vector<2x32xf32>, vector<32x32xf32>, vector<2x32xf32> -> vector<2x32xf32>
    %15 = arith.addf %13, %14 : vector<2x32xf32>
    %16 = math.tanh %15 : vector<2x32xf32>
    %17 = vector.extract_strided_slice %16 {offsets = [1, 0], sizes = [1, 32], strides = [1, 1]} : vector<2x32xf32> to vector<1x32xf32>
    %18 = vector.extract_strided_slice %10 {offsets = [1, 0, 0], sizes = [1, 2, 32], strides = [1, 1, 1]} : vector<8x2x32xf32> to vector<1x2x32xf32>
    %19 = vector.shape_cast %18 : vector<1x2x32xf32> to vector<2x32xf32>
    %cst_10 = arith.constant dense<0.000000e+00> : vector<2x32xf32>
    %20 = tpu.matmul %16, %0, %cst_10 {dimension_numbers = #tpu.dot_dimension_numbers<[1], [0], [0], [1], [0, 0, 1, 1], [], []>} : vector<2x32xf32>, vector<32x32xf32>, vector<2x32xf32> -> vector<2x32xf32>
    %21 = arith.addf %19, %20 : vector<2x32xf32>
    %22 = math.tanh %21 : vector<2x32xf32>
    %23 = vector.extract_strided_slice %22 {offsets = [1, 0], sizes = [1, 32], strides = [1, 1]} : vector<2x32xf32> to vector<1x32xf32>
    %24 = vector.extract_strided_slice %10 {offsets = [2, 0, 0], sizes = [1, 2, 32], strides = [1, 1, 1]} : vector<8x2x32xf32> to vector<1x2x32xf32>
    %25 = vector.shape_cast %24 : vector<1x2x32xf32> to vector<2x32xf32>
    %cst_11 = arith.constant dense<0.000000e+00> : vector<2x32xf32>
    %26 = tpu.matmul %22, %0, %cst_11 {dimension_numbers = #tpu.dot_dimension_numbers<[1], [0], [0], [1], [0, 0, 1, 1], [], []>} : vector<2x32xf32>, vector<32x32xf32>, vector<2x32xf32> -> vector<2x32xf32>
    %27 = arith.addf %25, %26 : vector<2x32xf32>
    %28 = math.tanh %27 : vector<2x32xf32>
    %29 = vector.extract_strided_slice %28 {offsets = [1, 0], sizes = [1, 32], strides = [1, 1]} : vector<2x32xf32> to vector<1x32xf32>
    %30 = vector.extract_strided_slice %10 {offsets = [3, 0, 0], sizes = [1, 2, 32], strides = [1, 1, 1]} : vector<8x2x32xf32> to vector<1x2x32xf32>
    %31 = vector.shape_cast %30 : vector<1x2x32xf32> to vector<2x32xf32>
    %cst_12 = arith.constant dense<0.000000e+00> : vector<2x32xf32>
    %32 = tpu.matmul %28, %0, %cst_12 {dimension_numbers = #tpu.dot_dimension_numbers<[1], [0], [0], [1], [0, 0, 1, 1], [], []>} : vector<2x32xf32>, vector<32x32xf32>, vector<2x32xf32> -> vector<2x32xf32>
    %33 = arith.addf %31, %32 : vector<2x32xf32>
    %34 = math.tanh %33 : vector<2x32xf32>
    %35 = vector.extract_strided_slice %34 {offsets = [1, 0], sizes = [1, 32], strides = [1, 1]} : vector<2x32xf32> to vector<1x32xf32>
    %36 = vector.extract_strided_slice %10 {offsets = [4, 0, 0], sizes = [1, 2, 32], strides = [1, 1, 1]} : vector<8x2x32xf32> to vector<1x2x32xf32>
    %37 = vector.shape_cast %36 : vector<1x2x32xf32> to vector<2x32xf32>
    %cst_13 = arith.constant dense<0.000000e+00> : vector<2x32xf32>
    %38 = tpu.matmul %34, %0, %cst_13 {dimension_numbers = #tpu.dot_dimension_numbers<[1], [0], [0], [1], [0, 0, 1, 1], [], []>} : vector<2x32xf32>, vector<32x32xf32>, vector<2x32xf32> -> vector<2x32xf32>
    %39 = arith.addf %37, %38 : vector<2x32xf32>
    %40 = math.tanh %39 : vector<2x32xf32>
    %41 = vector.extract_strided_slice %40 {offsets = [1, 0], sizes = [1, 32], strides = [1, 1]} : vector<2x32xf32> to vector<1x32xf32>
    %42 = vector.extract_strided_slice %10 {offsets = [5, 0, 0], sizes = [1, 2, 32], strides = [1, 1, 1]} : vector<8x2x32xf32> to vector<1x2x32xf32>
    %43 = vector.shape_cast %42 : vector<1x2x32xf32> to vector<2x32xf32>
    %cst_14 = arith.constant dense<0.000000e+00> : vector<2x32xf32>
    %44 = tpu.matmul %40, %0, %cst_14 {dimension_numbers = #tpu.dot_dimension_numbers<[1], [0], [0], [1], [0, 0, 1, 1], [], []>} : vector<2x32xf32>, vector<32x32xf32>, vector<2x32xf32> -> vector<2x32xf32>
    %45 = arith.addf %43, %44 : vector<2x32xf32>
    %46 = math.tanh %45 : vector<2x32xf32>
    %47 = vector.extract_strided_slice %46 {offsets = [1, 0], sizes = [1, 32], strides = [1, 1]} : vector<2x32xf32> to vector<1x32xf32>
    %48 = vector.extract_strided_slice %10 {offsets = [6, 0, 0], sizes = [1, 2, 32], strides = [1, 1, 1]} : vector<8x2x32xf32> to vector<1x2x32xf32>
    %49 = vector.shape_cast %48 : vector<1x2x32xf32> to vector<2x32xf32>
    %cst_15 = arith.constant dense<0.000000e+00> : vector<2x32xf32>
    %50 = tpu.matmul %46, %0, %cst_15 {dimension_numbers = #tpu.dot_dimension_numbers<[1], [0], [0], [1], [0, 0, 1, 1], [], []>} : vector<2x32xf32>, vector<32x32xf32>, vector<2x32xf32> -> vector<2x32xf32>
    %51 = arith.addf %49, %50 : vector<2x32xf32>
    %52 = math.tanh %51 : vector<2x32xf32>
    %53 = vector.extract_strided_slice %52 {offsets = [1, 0], sizes = [1, 32], strides = [1, 1]} : vector<2x32xf32> to vector<1x32xf32>
    %54 = vector.extract_strided_slice %10 {offsets = [7, 0, 0], sizes = [1, 2, 32], strides = [1, 1, 1]} : vector<8x2x32xf32> to vector<1x2x32xf32>
    %55 = vector.shape_cast %54 : vector<1x2x32xf32> to vector<2x32xf32>
    %cst_16 = arith.constant dense<0.000000e+00> : vector<2x32xf32>
    %56 = tpu.matmul %52, %0, %cst_16 {dimension_numbers = #tpu.dot_dimension_numbers<[1], [0], [0], [1], [0, 0, 1, 1], [], []>} : vector<2x32xf32>, vector<32x32xf32>, vector<2x32xf32> -> vector<2x32xf32>
    %57 = arith.addf %55, %56 : vector<2x32xf32>
    %58 = math.tanh %57 : vector<2x32xf32>
    %59 = vector.extract_strided_slice %58 {offsets = [1, 0], sizes = [1, 32], strides = [1, 1]} : vector<2x32xf32> to vector<1x32xf32>
    %c0_17 = arith.constant 0 : index
    %c0_18 = arith.constant 0 : index
    %60 = vector.load %arg8[%c0_17, %c0_18] : memref<2x32xf32, #tpu.memory_space<vmem>>, vector<2x32xf32>
    tpu.vector_store %arg8[%c0_17, %c0_18], %58 {strides = array<i32>} : memref<2x32xf32, #tpu.memory_space<vmem>>, vector<2x32xf32>,
    %61 = tpu.concatenate %17, %23, %29, %35, %41, %47, %53, %59 in 0 : vector<1x32xf32>, vector<1x32xf32>, vector<1x32xf32>, vector<1x32xf32>, vector<1x32xf32>, vector<1x32xf32>, vector<1x32xf32>, vector<1x32xf32> -> vector<8x32xf32>
    %c0_19 = arith.constant 0 : index
    %c0_20 = arith.constant 0 : index
    %62 = vector.load %arg5[%c0_19, %c0_20] : memref<32x1xf32, #tpu.memory_space<vmem>>, vector<32x1xf32>
    %cst_21 = arith.constant dense<0.000000e+00> : vector<8x1xf32>
    %63 = tpu.matmul %61, %62, %cst_21 {dimension_numbers = #tpu.dot_dimension_numbers<[1], [0], [0], [1], [0, 0, 1, 1], [], []>} : vector<8x32xf32>, vector<32x1xf32>, vector<8x1xf32> -> vector<8x1xf32>
    %c0_22 = arith.constant 0 : index
    %c0_23 = arith.constant 0 : index
    %64 = vector.load %arg6[%c0_22, %c0_23] : memref<1x1xf32, #tpu.memory_space<vmem>>, vector<1x1xf32>
    %65 = vector.broadcast %64 : vector<1x1xf32> to vector<8x1xf32>
    %66 = arith.addf %63, %65 : vector<8x1xf32>
    %c0_24 = arith.constant 0 : index
    %c0_25 = arith.constant 0 : index
    %67 = vector.load %arg7[%c0_24, %c0_25] : memref<8x1xf32, #tpu.memory_space<vmem>>, vector<8x1xf32>
    tpu.vector_store %arg7[%c0_24, %c0_25], %66 {strides = array<i32>} : memref<8x1xf32, #tpu.memory_space<vmem>>, vector<8x1xf32>,
    return
  }
}

</mosaic_0001>

<bundles_post_ra>
// kernel: tpu_custom_call.1
= control target key start
LH: loop header
LB: loop body
LE: loop exit
PB: predicated region body
PF: predicated region fallthrough
CT: control target
= control target key end

     0   :  { %s594_s0 = inlined_call_operand.vmem [shape: f32[8,2,1], index: 0, kind: input, shape index: {}]   ;;  %s595_s1 = inlined_call_operand.vmem [shape: f32[2,32], index: 1, kind: input, shape index: {}]   ;;  %s596_s2 = inlined_call_operand.vmem [shape: f32[32,32], index: 2, kind: input, shape index: {}]   ;;  %s597_s3 = inlined_call_operand.vmem [shape: f32[1,32], index: 3, kind: input, shape index: {}]   ;;  %s598_s4 = inlined_call_operand.vmem [shape: f32[1,32], index: 4, kind: input, shape index: {}]   ;;  %s599_s5 = inlined_call_operand.vmem [shape: f32[32,1], index: 5, kind: input, shape index: {}]   ;;  %s600_s6 = inlined_call_operand.<no memory space> [shape: f32[1,1], index: 6, kind: input, shape index: {}]   ;;  %s601_s7 = inlined_call_operand.vmem [shape: f32[8,1], index: 7, kind: output, shape index: {0}]   ;;  %s602_s8 = inlined_call_operand.hbm [shape: f32[2,32], index: 8, kind: output, shape index: {1}]  }
   0x1   :  { %v14_v0 = vstv %s600_s6 }
   0x2   :  { %15 = vst [vmem:[#allocation2] sm:$0x1] %v14_v0 }
   0x3   :  { %v34_v1 = vld [vmem:[%s596_s2 + $0x18] sm:$0xff]  ;;  %v37_v2 = vld [vmem:[%s594_s0] sm:$0x3]  ;;  %v33_v3 = vld [vmem:[%s596_s2 + $0x10] sm:$0xff]  ;;  %v452_v4 = vmov 0  }
   0x4   :  { %404 = vset.pattern.permute.xlu0 %v452_v4  ;;  %124 = vmatpush.msra.mxu0 %v34_v1  ;;  %v32_v5 = vld [vmem:[%s596_s2 + $0x8] sm:$0xff] }
   0x5   :  { %47 = vperm.xlu0 %404, %v37_v2   ;;  %149 = vmatpush.msra.mxu1 %v34_v1 }
   0x6   :  { %125 = vmatpush.msra.mxu0 %v33_v3  ;;  %174 = vmatpush.msra.mxu2 %v34_v1 }
   0x7   :  { %16 = vsyncpa [#allocation4], 0  ;;  %v31_v6 = vld [vmem:[%s596_s2] sm:$0xff]  ;;  %150 = vmatpush.msra.mxu1 %v33_v3  ;;  %405 = vset.pattern.permute.xlu1 %v452_v4  ;;  %vm108_vm0 = vcmask 261120   ;;  %v43_v9 = vld [vmem:[%s594_s0 + $0xc] sm:$0x3] }
   0x8   :  { %126 = vmatpush.msra.mxu0 %v32_v5  ;;  %v107_v7 = vld [vmem:[%s595_s1] sm:$0x3]  ;;  %175 = vmatpush.msra.mxu2 %v33_v3  ;;  %v38_v8 = vld [vmem:[%s594_s0 + $0x2] sm:$0x3]  ;;  %v39_v18 = vld [vmem:[%s594_s0 + $0x4] sm:$0x3] }
   0x9   :  { %151 = vmatpush.msra.mxu1 %v32_v5  ;;  %199 = vmatpush.msra.mxu3 %v34_v1  ;;  %v530_v10 = vld [vmem:[%s597_s3] ss:$0 sm:$0xff]  ;;  %v40_v19 = vld [vmem:[%s594_s0 + $0x6] sm:$0x3]  ;;  %v44_v20 = vld [vmem:[%s594_s0 + $0xe] sm:$0x3] }
   0xa   :  { %127 = vmatpush.msra.mxu0 %v31_v6  ;;  %176 = vmatpush.msra.mxu2 %v32_v5  ;;  %v536_v13 = vld [vmem:[%s598_s4] ss:$0 sm:$0xff]  ;;  %vm326_vm1 = vcmask 1040384   ;;  %vm328_vm2 = vcmask 1041408   ;;  %v41_v37 = vld [vmem:[%s594_s0 + $0x8] sm:$0x3] }
   0xb   :  { %393 = vmatmul.msk.f32.vlgmr.msra.gmra.mxu0 %vm108_vm0, %v107_v7  ;;  %152 = vmatpush.msra.mxu1 %v31_v6  ;;  %v42_v38 = vld [vmem:[%s594_s0 + $0xa] sm:$0x3]  ;;  %vm330_vm3 = vcmask 1042432   ;;  %vm332_vm4 = vcmask 1043456   ;;  %vm334_vm5 = vcmask 1044480   ;;  %vm336_vm6 = vcmask 1045504  }
   0xc   :  { %177 = vmatpush.msra.mxu2 %v31_v6  ;;  %200 = vmatpush.msra.mxu3 %v33_v3  ;;  %v343_v7 = vld [vmem:[%s599_s5 + $0x18] sm:$0xff]  ;;  %vm309_vm7 = vcmask 254976   ;;  %vm338_vm8 = vcmask 1046528   ;;  %s453_s16 = smov [#allocation3]   ;;  %vm371_vm9 = vcmask 7168  }
   0xd   :  { %52 = vperm.xlu0 %404, %v38_v8   ;;  %224 = vmatpush.msrb.mxu0 %v34_v1  ;;  %v342_v8 = vld [vmem:[%s599_s5 + $0x10] sm:$0xff]  ;;  %s380_s17 = sshll.u32 %s453_s16, 4  ;;  %s381_s17 = int_to_ptr.vmem [resolvable:$true] %s380_s17 }
   0xe   :  { %201 = vmatpush.msra.mxu3 %v32_v5  ;;  %406 = vset.pattern.permute.xlu2 %v452_v4 }
   0xf   :  { %225 = vmatpush.msrb.mxu0 %v33_v3  ;;  %249 = vmatpush.msrb.mxu1 %v34_v1 }
  0x10   :  { %202 = vmatpush.msra.mxu3 %v31_v6  ;;  %274 = vmatpush.msrb.mxu2 %v34_v1 }
  0x11   :  { %226 = vmatpush.msrb.mxu0 %v32_v5  ;;  %250 = vmatpush.msrb.mxu1 %v33_v3 }
  0x12   :  { %275 = vmatpush.msrb.mxu2 %v33_v3  ;;  %299 = vmatpush.msrb.mxu3 %v34_v1 }
  0x13   :  { %227 = vmatpush.msrb.mxu0 %v31_v6  ;;  %251 = vmatpush.msrb.mxu1 %v32_v5 }
  0x14   :  { %276 = vmatpush.msrb.mxu2 %v32_v5  ;;  %300 = vmatpush.msrb.mxu3 %v33_v3 }
  0x15   :  { %77 = vperm.xlu0 %404, %v43_v9   ;;  %252 = vmatpush.msrb.mxu1 %v31_v6  ;;  %v341_v9 = vld [vmem:[%s599_s5 + $0x8] sm:$0xff] }
  0x16   :  { %277 = vmatpush.msrb.mxu2 %v31_v6  ;;  %301 = vmatpush.msrb.mxu3 %v32_v5 }
  0x17   :  { %57 = vperm.xlu1 %405, %v39_v18   ;;  %67 = vperm.xlu2 %406, %v41_v37  }
  0x18   :  { %302 = vmatpush.msrb.mxu3 %v31_v6  ;;  %363 = vmatpush.msra.mxu0 %v343_v7 }
  0x1a   :  { %364 = vmatpush.msra.mxu0 %v342_v8 }
  0x1c   :  { %365 = vmatpush.msra.mxu0 %v341_v9 }
  0x1f   :  { %62 = vperm.xlu1 %405, %v40_v19   ;;  %72 = vperm.xlu2 %406, %v42_v38  }
  0x27   :  { %82 = vperm.xlu1 %405, %v44_v20  }
  0x71   :  { %v68_v47 = vpop.permute.xlu2 %67 }
  0x72   :  { %v92_v48 = vmul.f32 %v530_v10, %v68_v47 }
  0x74   :  { %v103_v49 = vadd.f32 %v536_v13, %v92_v48 }
  0x77   :  { %v48_v11 = vpop.permute.xlu0 %47 }
  0x78   :  { %v88_v12 = vmul.f32 %v530_v10, %v48_v11  ;;  %v340_v11 = vld [vmem:[%s599_s5] sm:$0xff]  ;;  %s382_s5 = sshll.u32 %s602_s8, 4  ;;  %s383_s5 = int_to_ptr.hbm [resolvable:$true] %s382_s5 }
  0x79   :  { %v73_v55 = vpop.permute.xlu2 %72  ;;  %366 = vmatpush.msra.mxu0 %v340_v11 }
  0x7a   :  { %v99_v14 = vadd.f32 %v536_v13, %v88_v12  ;;  %v93_v56 = vmul.f32 %v530_v10, %v73_v55 }
  0x7c   :  { %v104_v57 = vadd.f32 %v536_v13, %v93_v56 }
  0x7f   :  { %v53_v21 = vpop.permute.xlu0 %52 }
  0x80   :  { %v89_v22 = vmul.f32 %v530_v10, %v53_v21 }
  0x82   :  { %v100_v23 = vadd.f32 %v536_v13, %v89_v22 }
  0x87   :  { %v78_v63 = vpop.permute.xlu0 %77 }
  0x88   :  { %v129_v15 = vpop.f32.mrf.mxu0  ;;  %v94_v0 = vmul.f32 %v530_v10, %v78_v63 }
  0x89   :  { %v132_v16 = vadd.f32 %v129_v15, %v99_v14  ;;  %v58_v29 = vpop.permute.xlu1 %57 }
  0x8a   :  { %v90_v30 = vmul.f32 %v530_v10, %v58_v29  ;;  %v105_v1 = vadd.f32 %v536_v13, %v94_v0 }
  0x8b   :  { %410 = vtanh.f32 %v132_v16 }
  0x8c   :  { %v101_v31 = vadd.f32 %v536_v13, %v90_v30 }
  0x91   :  { %v411_v17 = vpop.eup %410  ;;  %v63_v39 = vpop.permute.xlu1 %62 }
  0x92   :  { %394 = vmatmul.msk.f32.vlgmr.msra.gmra.mxu1 %vm108_vm0, %v411_v17  ;;  %v311_v26 = vrot.slane %v411_v17, 1  ;;  %v91_v40 = vmul.f32 %v530_v10, %v63_v39 }
  0x94   :  { %v102_v41 = vadd.f32 %v536_v13, %v91_v40 }
  0x99   :  { %v83_v12 = vpop.permute.xlu1 %82 }
  0x9a   :  { %v95_v14 = vmul.f32 %v530_v10, %v83_v12  ;;  %v409_v10 = vld [vmem:[#allocation2] ss:$0 sm:$0xff] }
  0x9c   :  { %v106_v15 = vadd.f32 %v536_v13, %v95_v14 }
 0x10f   :  { %v154_v24 = vpop.f32.mrf.mxu1 }
 0x110   :  { %v157_v25 = vadd.f32 %v154_v24, %v100_v23 }
 0x112   :  { %412 = vtanh.f32 %v157_v25 }
 0x118   :  { %v413_v27 = vpop.eup %412 }
 0x119   :  { %395 = vmatmul.msk.f32.vlgmr.msra.gmra.mxu2 %vm108_vm0, %v413_v27  ;;  %v327_v28 = vsel %vm326_vm1, %v311_v26, %v413_v27 }
 0x19c   :  { %v179_v32 = vpop.f32.mrf.mxu2 }
 0x19d   :  { %v182_v33 = vadd.f32 %v179_v32, %v101_v31 }
 0x19f   :  { %414 = vtanh.f32 %v182_v33 }
 0x1a5   :  { %v415_v34 = vpop.eup %414 }
 0x1a6   :  { %v313_v35 = vrot.slane %v415_v34, 7  ;;  %396 = vmatmul.msk.f32.vlgmr.msra.gmra.mxu3 %vm108_vm0, %v415_v34 }
 0x1a8   :  { %v329_v36 = vsel %vm328_vm2, %v327_v28, %v313_v35 }
 0x229   :  { %v204_v42 = vpop.f32.mrf.mxu3 }
 0x22a   :  { %v207_v43 = vadd.f32 %v204_v42, %v102_v41 }
 0x22c   :  { %416 = vtanh.f32 %v207_v43 }
 0x232   :  { %v417_v44 = vpop.eup %416 }
 0x233   :  { %v315_v45 = vrot.slane %v417_v44, 6  ;;  %397 = vmatmul.msk.f32.vlgmr.msrb.gmra.mxu0 %vm108_vm0, %v417_v44 }
 0x235   :  { %v331_v46 = vsel %vm330_vm3, %v329_v36, %v315_v45 }
 0x2b0   :  { %v229_v50 = vpop.f32.mrf.mxu0 }
 0x2b1   :  { %v232_v51 = vadd.f32 %v229_v50, %v103_v49 }
 0x2b3   :  { %418 = vtanh.f32 %v232_v51 }
 0x2b9   :  { %v419_v52 = vpop.eup %418 }
 0x2ba   :  { %v317_v53 = vrot.slane %v419_v52, 5  ;;  %398 = vmatmul.msk.f32.vlgmr.msrb.gmra.mxu1 %vm108_vm0, %v419_v52 }
 0x2bc   :  { %v333_v54 = vsel %vm332_vm4, %v331_v46, %v317_v53 }
 0x337   :  { %v254_v58 = vpop.f32.mrf.mxu1 }
 0x338   :  { %v257_v59 = vadd.f32 %v254_v58, %v104_v57 }
 0x33a   :  { %420 = vtanh.f32 %v257_v59 }
 0x340   :  { %v421_v60 = vpop.eup %420 }
 0x341   :  { %v319_v61 = vrot.slane %v421_v60, 4  ;;  %399 = vmatmul.msk.f32.vlgmr.msrb.gmra.mxu2 %vm108_vm0, %v421_v60 }
 0x343   :  { %v335_v62 = vsel %vm334_vm5, %v333_v54, %v319_v61 }
 0x3c4   :  { %v279_v2 = vpop.f32.mrf.mxu2 }
 0x3c5   :  { %v282_v3 = vadd.f32 %v279_v2, %v105_v1 }
 0x3c7   :  { %422 = vtanh.f32 %v282_v3 }
 0x3cd   :  { %v423_v4 = vpop.eup %422 }
 0x3ce   :  { %v321_v5 = vrot.slane %v423_v4, 3  ;;  %400 = vmatmul.msk.f32.vlgmr.msrb.gmra.mxu3 %vm108_vm0, %v423_v4 }
 0x3d0   :  { %v337_v6 = vsel %vm336_vm6, %v335_v62, %v321_v5 }
 0x451   :  { %v304_v16 = vpop.f32.mrf.mxu3 }
 0x452   :  { %v307_v17 = vadd.f32 %v304_v16, %v106_v15 }
 0x454   :  { %424 = vtanh.f32 %v307_v17 }
 0x45a   :  { %v425_v18 = vpop.eup %424 }
 0x45b   :  { %v324_v19 = vrot.slane %v425_v18, 2  ;;  %310 = vst.msk [vmem:[#allocation3] sm:$0x3] %vm309_vm7, %v425_v18 }
 0x45c   :  { %385 = dma.vmem_to_hbm [thread:$0]  %s381_s17, 32, %s383_s5, [#allocation4]  }
 0x45d   :  { %v339_v20 = vsel %vm338_vm8, %v337_v6, %v324_v19 }
 0x45e   :  { %401 = vmatmul.msk.f32.vlgmr.msra.gmra.mxu0 %vm108_vm0, %v339_v20 }
 0x4db   :  { %v368_v13 = vpop.f32.mrf.mxu0 }
 0x4dc   :  { %v369_v21 = vadd.f32 %v409_v10, %v368_v13 }
 0x4de   :  { %372 = vst.msk [vmem:[%s601_s7] sm:$0xff] %vm371_vm9, %v369_v21 }
 0x4df   :  { %450 = dma.done.wait [#allocation4], 32  }
 0x4e0   :  { %451 = vsyncadd [#allocation4], 4294967264 }
 0x4e1   :  { %392 = vsyncpa [#allocation4], 1 }

</bundles_post_ra>
